<compile_context>
chip_gen: v7x
topology: tpu7x:2x2x1
jax: 0.10.0
libtpu: 0.0.40
codegen_flags: <defaults>
</compile_context>

<pallas_src>
import functools

import jax
import jax.numpy as jnp
from jax.experimental import pallas as pl
from jax.experimental.pallas import tpu as pltpu


def _round_up(a, b):
    return ((a + b - 1) // b) * b


def _vmem_limit_bytes():
    """Generation-aware VMEM request: ~80% of physical, capped at 100 MiB.

    v5e/v6e (128 MiB physical) -> 100 MiB; v7x (64 MiB physical) -> ~51 MiB.
    Never requests 100% of a core's VMEM (leaves compiler-scratch headroom).
    """
    try:
        cap = int(pltpu.get_tpu_info().vmem_capacity_bytes)
    except Exception:  # conservative fallback
        cap = 64 * 1024 * 1024
    return min(int(cap * 0.8), 100 * 1024 * 1024)


# ---------------------------------------------------------------------------
# Kernels.  Refs:
#   x_ref:  (tm, hid_p)  compute_dtype     w1_ref: (hid_p, tpf) compute_dtype
#   b1_ref: (n_k, tpf)   f32 (resident)    w2_ref: (tpf, hid_p) compute_dtype
#   b2_ref: (1, hid_p)   f32 (resident)    o_ref:  (tm, hid_p)
# Grid: (row tiles [parallel], pf slices k [arbitrary reduction, last]).
# ---------------------------------------------------------------------------

def _ffn_kernel_noacc(x_ref, w1_ref, b1_ref, w2_ref, b2_ref, o_ref):
    """f32 output: accumulate directly into the resident output block."""
    k = pl.program_id(1)

    @pl.when(k == 0)
    def _():
        # Fold the output bias into the initialization (o_ref is f32 here).
        o_ref[...] = jnp.broadcast_to(b2_ref[...], o_ref.shape)

    h = jnp.dot(x_ref[...], w1_ref[...], preferred_element_type=jnp.float32)
    h = jnp.maximum(h + b1_ref[pl.ds(k, 1), :], 0.0)
    # dropout: identity (eval mode)
    o_ref[...] += jnp.dot(h.astype(w2_ref.dtype), w2_ref[...],
                          preferred_element_type=jnp.float32)


def _ffn_kernel_acc(x_ref, w1_ref, b1_ref, w2_ref, b2_ref, o_ref, acc_ref):
    """Low-precision output: accumulate in f32 scratch, cast once at the end."""
    k = pl.program_id(1)

    @pl.when(k == 0)
    def _():
        acc_ref[...] = jnp.broadcast_to(b2_ref[...], acc_ref.shape)

    h = jnp.dot(x_ref[...], w1_ref[...], preferred_element_type=jnp.float32)
    h = jnp.maximum(h + b1_ref[pl.ds(k, 1), :], 0.0)
    # dropout: identity (eval mode)
    acc_ref[...] += jnp.dot(h.astype(w2_ref.dtype), w2_ref[...],
                            preferred_element_type=jnp.float32)

    @pl.when(k == pl.num_programs(1) - 1)
    def _():
        o_ref[...] = acc_ref[...].astype(o_ref.dtype)


def prepare_ffn_params(w1, b1, w2, b2, *, compute_dtype=jnp.bfloat16):
    """Pad FFN weights to lane-dense (128-multiple) shapes and cast the matmul
    operands to `compute_dtype` ONCE, outside the per-token hot path.

    Weights are stored as (in_features, out_features) = PyTorch weight.T.
    """
    hid, pf = w1.shape
    hid_p, pf_p = _round_up(hid, 128), _round_up(pf, 128)
    w1p = jnp.pad(w1, ((0, hid_p - hid), (0, pf_p - pf))).astype(compute_dtype)
    w2p = jnp.pad(w2, ((0, pf_p - pf), (0, hid_p - hid))).astype(compute_dtype)
    b1p = jnp.pad(b1, (0, pf_p - pf)).astype(jnp.float32)
    b2p = jnp.pad(b2, (0, hid_p - hid)).astype(jnp.float32)
    return w1p, b1p, w2p, b2p


@functools.partial(jax.jit, static_argnames=("tm", "tpf", "compute_dtype"))
def positionwise_ffn(x, w1, b1, w2, b2, *, tm=512, tpf=512,
                     compute_dtype=jnp.bfloat16):
    """x: [batch, seq, hid]; w1: [hid, pf]; b1: [pf]; w2: [pf, hid]; b2: [hid].

    Accepts either raw parameters or parameters already processed by
    `prepare_ffn_params` (then no padding/casting ops are emitted per call).
    """
    batch, seq, hid = x.shape
    m = batch * seq
    out_dtype = x.dtype
    use_acc = out_dtype != jnp.float32

    # ---- lane-dense feature dims -------------------------------------------
    hid_p = _round_up(hid, 128)
    pf = w1.shape[1]
    pf_p = _round_up(pf, 128)

    # tpf: largest multiple of 128, <= requested, dividing pf_p exactly.
    tpf = max(128, (min(tpf, pf_p) // 128) * 128)
    while pf_p % tpf:
        tpf -= 128

    # ---- tile sizing under the VMEM budget ----------------------------------
    tm = min(tm, _round_up(m, 8))
    limit = _vmem_limit_bytes()
    c_sz = jax.dtypes.canonicalize_dtype(compute_dtype).itemsize
    o_sz = jax.dtypes.canonicalize_dtype(out_dtype).itemsize

    def vmem_estimate(tm_, tpf_):
        # 2x-buffered x / W1 / W2 / out tiles + resident biases + f32 acc + h.
        return (2 * tm_ * hid_p * c_sz             # x tile
                + 2 * hid_p * tpf_ * c_sz          # W1 slice
                + 2 * tpf_ * hid_p * c_sz          # W2 slice
                + 2 * tm_ * hid_p * o_sz           # out tile
                + (tm_ * hid_p * 4 if use_acc else 0)
                + tm_ * tpf_ * 4                   # (tm, tpf) f32 intermediate
                + (pf_p + hid_p) * 4)              # biases

    def next_smaller_divisor(t):
        t -= 128
        while t > 128 and pf_p % t:
            t -= 128
        return max(t, 128)

    # Trade tpf first (it doesn't affect weight reuse), then tm.
    while vmem_estimate(tm, tpf) > limit and tpf > 256:
        tpf = next_smaller_divisor(tpf)
    while vmem_estimate(tm, tpf) > limit and tm > 128:
        tm = max(128, _round_up(tm // 2, 8))

    # Balance rows across tiles; give the v7x megacore >= 2 row tiles to shard
    # (costs at most one extra weight stream on single-TC chips when m is tiny).
    n_row = pl.cdiv(m, tm)
    if m > 8:
        n_row = max(n_row, 2)
    tm = _round_up(pl.cdiv(m, n_row), 8)
    m_p = n_row * tm
    n_k = pf_p // tpf

    # ---- pad / cast only when needed (prepared params skip all of this) -----
    x2 = x.reshape(m, hid)
    if x2.dtype != compute_dtype:
        x2 = x2.astype(compute_dtype)
    if (m_p, hid_p) != (m, hid):
        x2 = jnp.pad(x2, ((0, m_p - m), (0, hid_p - hid)))

    if w1.shape != (hid_p, pf_p) or w1.dtype != compute_dtype:
        w1 = jnp.pad(w1, ((0, hid_p - w1.shape[0]),
                          (0, pf_p - w1.shape[1]))).astype(compute_dtype)
    if w2.shape != (pf_p, hid_p) or w2.dtype != compute_dtype:
        w2 = jnp.pad(w2, ((0, pf_p - w2.shape[0]),
                          (0, hid_p - w2.shape[1]))).astype(compute_dtype)
    if b1.shape != (pf_p,):
        b1 = jnp.pad(b1, (0, pf_p - b1.shape[0]))
    if b2.shape != (hid_p,):
        b2 = jnp.pad(b2, (0, hid_p - b2.shape[0]))
    b1r = b1.astype(jnp.float32).reshape(n_k, tpf)   # resident, sliced by k
    b2r = b2.astype(jnp.float32).reshape(1, hid_p)   # resident

    grid = (m_p // tm, n_k)
    kernel = _ffn_kernel_acc if use_acc else _ffn_kernel_noacc
    scratch = [pltpu.VMEM((tm, hid_p), jnp.float32)] if use_acc else []

    out = pl.pallas_call(
        kernel,
        out_shape=jax.ShapeDtypeStruct((m_p, hid_p), out_dtype),
        grid_spec=pltpu.PrefetchScalarGridSpec(
            num_scalar_prefetch=0,
            grid=grid,
            in_specs=[
                pl.BlockSpec((tm, hid_p), lambda i, k: (i, 0)),    # x row tile
                pl.BlockSpec((hid_p, tpf), lambda i, k: (0, k)),   # W1 pf-slice
                pl.BlockSpec((n_k, tpf), lambda i, k: (0, 0)),     # b1 resident
                pl.BlockSpec((tpf, hid_p), lambda i, k: (k, 0)),   # W2 pf-slice
                pl.BlockSpec((1, hid_p), lambda i, k: (0, 0)),     # b2 resident
            ],
            out_specs=pl.BlockSpec((tm, hid_p), lambda i, k: (i, 0)),
            scratch_shapes=scratch,
        ),
        compiler_params=pltpu.CompilerParams(
            dimension_semantics=("parallel", "arbitrary"),
            vmem_limit_bytes=limit,
        ),
    )(x2, w1, b1r, w2, b2r)

    return out[:m, :hid].reshape(batch, seq, hid)


def _ref_ffn(x, w1, b1, w2, b2):
    h = jnp.maximum(x @ w1 + b1, 0.0)
    return h @ w2 + b2


if __name__ == "__main__":
    batch, seq, hid_dim, pf_dim = 2, 8, 32, 64

    key = jax.random.PRNGKey(0)
    kx, k1, k2, k3, k4 = jax.random.split(key, 5)

    x = jax.random.normal(kx, (batch, seq, hid_dim), dtype=jnp.float32)

    # nn.Linear-style uniform(-1/sqrt(in), 1/sqrt(in)) init, stored as W^T.
    lim1 = 1.0 / jnp.sqrt(jnp.float32(hid_dim))
    lim2 = 1.0 / jnp.sqrt(jnp.float32(pf_dim))
    w1 = jax.random.uniform(k1, (hid_dim, pf_dim), jnp.float32, -lim1, lim1)
    b1 = jax.random.uniform(k2, (pf_dim,), jnp.float32, -lim1, lim1)
    w2 = jax.random.uniform(k3, (pf_dim, hid_dim), jnp.float32, -lim2, lim2)
    b2 = jax.random.uniform(k4, (hid_dim,), jnp.float32, -lim2, lim2)

    ref = _ref_ffn(x, w1, b1, w2, b2)

    # 1) f32 MXU path — bit-comparable to the reference (tight tolerance).
    out_f32 = jax.block_until_ready(
        positionwise_ffn(x, w1, b1, w2, b2, compute_dtype=jnp.float32))
    assert out_f32.shape == (batch, seq, hid_dim)
    assert jnp.allclose(out_f32, ref, atol=1e-5, rtol=1e-5)

    # 2) Default bf16-MXU path with weights prepared once outside the hot path.
    w1p, b1p, w2p, b2p = prepare_ffn_params(w1, b1, w2, b2)
    out_bf = jax.block_until_ready(positionwise_ffn(x, w1p, b1p, w2p, b2p))
    assert out_bf.shape == (batch, seq, hid_dim)
    assert jnp.allclose(out_bf, ref, atol=7.5e-2, rtol=5e-2)

    # 3) bf16 activations in / bf16 out (exercises the f32-scratch accumulator).
    out_bb = jax.block_until_ready(
        positionwise_ffn(x.astype(jnp.bfloat16), w1p, b1p, w2p, b2p))
    assert out_bb.dtype == jnp.bfloat16
    assert jnp.allclose(out_bb.astype(jnp.float32), ref, atol=7.5e-2, rtol=5e-2)

    print("KERNEL_OK")
</pallas_src>

<mosaic_0001>
module attributes {stable_mosaic.version = 11 : i64} {
  func.func @_ffn_kernel_noacc(%arg0: i32, %arg1: i32, %arg2: memref<8x128xf32, #tpu.memory_space<vmem>>, %arg3: memref<128x128xf32, #tpu.memory_space<vmem>>, %arg4: memref<1x128xf32, #tpu.memory_space<vmem>>, %arg5: memref<128x128xf32, #tpu.memory_space<vmem>>, %arg6: memref<1x128xf32, #tpu.memory_space<vmem>>, %arg7: memref<8x128xf32, #tpu.memory_space<vmem>>) attributes {dimension_semantics = [#tpu.dimension_semantics<parallel>, #tpu.dimension_semantics<arbitrary>], iteration_bounds = array<i64: 2, 1>, scalar_prefetch = 0 : i64, scratch_operands = 0 : i64, tpu.core_type = #tpu.core_type<tc>, window_params = [{transform_indices = @transform_0, window_bounds = array<i64: 8, 128>}, {transform_indices = @transform_1, window_bounds = array<i64: 128, 128>}, {pipeline_mode = #tpu.pipeline_mode<synchronous>, transform_indices = @transform_2, window_bounds = array<i64: 1, 128>}, {transform_indices = @transform_3, window_bounds = array<i64: 128, 128>}, {pipeline_mode = #tpu.pipeline_mode<synchronous>, transform_indices = @transform_4, window_bounds = array<i64: 1, 128>}, {transform_indices = @transform_5, window_bounds = array<i64: 8, 128>}]} {
    %c0_i32 = arith.constant 0 : i32
    %0 = arith.cmpi eq, %arg1, %c0_i32 : i32
    %1 = arith.extui %0 : i1 to i32
    %c0_i32_0 = arith.constant 0 : i32
    %2 = arith.cmpi ne, %1, %c0_i32_0 : i32
    scf.if %2 {
      %c0_13 = arith.constant 0 : index
      %c0_14 = arith.constant 0 : index
      %17 = vector.load %arg6[%c0_13, %c0_14] : memref<1x128xf32, #tpu.memory_space<vmem>>, vector<1x128xf32>
      %18 = vector.shape_cast %17 : vector<1x128xf32> to vector<1x128xf32>
      %19 = vector.broadcast %18 : vector<1x128xf32> to vector<8x128xf32>
      %c0_15 = arith.constant 0 : index
      %c0_16 = arith.constant 0 : index
      %20 = vector.load %arg7[%c0_15, %c0_16] : memref<8x128xf32, #tpu.memory_space<vmem>>, vector<8x128xf32>
      tpu.vector_store %arg7[%c0_15, %c0_16], %19 {strides = array<i32>} : memref<8x128xf32, #tpu.memory_space<vmem>>, vector<8x128xf32>,
    } else {
    }
    %c0 = arith.constant 0 : index
    %c0_1 = arith.constant 0 : index
    %3 = vector.load %arg2[%c0, %c0_1] : memref<8x128xf32, #tpu.memory_space<vmem>>, vector<8x128xf32>
    %c0_2 = arith.constant 0 : index
    %c0_3 = arith.constant 0 : index
    %4 = vector.load %arg3[%c0_2, %c0_3] : memref<128x128xf32, #tpu.memory_space<vmem>>, vector<128x128xf32>
    %cst = arith.constant dense<0.000000e+00> : vector<8x128xf32>
    %5 = tpu.matmul %3, %4, %cst {dimension_numbers = #tpu.dot_dimension_numbers<[1], [0], [0], [1], [0, 0, 1, 1], [], []>} : vector<8x128xf32>, vector<128x128xf32>, vector<8x128xf32> -> vector<8x128xf32>
    %6 = arith.index_cast %arg1 : i32 to index
    %c0_4 = arith.constant 0 : index
    %7 = vector.load %arg4[%6, %c0_4] : memref<1x128xf32, #tpu.memory_space<vmem>>, vector<1x128xf32>
    %8 = vector.broadcast %7 : vector<1x128xf32> to vector<8x128xf32>
    %9 = arith.addf %5, %8 : vector<8x128xf32>
    %cst_5 = arith.constant 0.000000e+00 : f32
    %10 = vector.broadcast %cst_5 : f32 to vector<8x128xf32>
    %11 = arith.maximumf %9, %10 : vector<8x128xf32>
    %c0_6 = arith.constant 0 : index
    %c0_7 = arith.constant 0 : index
    %12 = vector.load %arg7[%c0_6, %c0_7] : memref<8x128xf32, #tpu.memory_space<vmem>>, vector<8x128xf32>
    %c0_8 = arith.constant 0 : index
    %c0_9 = arith.constant 0 : index
    %13 = vector.load %arg5[%c0_8, %c0_9] : memref<128x128xf32, #tpu.memory_space<vmem>>, vector<128x128xf32>
    %cst_10 = arith.constant dense<0.000000e+00> : vector<8x128xf32>
    %14 = tpu.matmul %11, %13, %cst_10 {dimension_numbers = #tpu.dot_dimension_numbers<[1], [0], [0], [1], [0, 0, 1, 1], [], []>} : vector<8x128xf32>, vector<128x128xf32>, vector<8x128xf32> -> vector<8x128xf32>
    %15 = arith.addf %12, %14 : vector<8x128xf32>
    %c0_11 = arith.constant 0 : index
    %c0_12 = arith.constant 0 : index
    %16 = vector.load %arg7[%c0_11, %c0_12] : memref<8x128xf32, #tpu.memory_space<vmem>>, vector<8x128xf32>
    tpu.vector_store %arg7[%c0_11, %c0_12], %15 {strides = array<i32>} : memref<8x128xf32, #tpu.memory_space<vmem>>, vector<8x128xf32>,
    return
  }
  func.func @transform_0(%arg0: i32, %arg1: i32) -> (i32, i32) {
    %c0_i32 = arith.constant 0 : i32
    %c0_i32_0 = arith.constant 0 : i32
    return %arg0, %c0_i32 : i32, i32
  }
  func.func @transform_1(%arg0: i32, %arg1: i32) -> (i32, i32) {
    %c0_i32 = arith.constant 0 : i32
    %c0_i32_0 = arith.constant 0 : i32
    return %c0_i32, %arg1 : i32, i32
  }
  func.func @transform_2(%arg0: i32, %arg1: i32) -> (i32, i32) {
    %c0_i32 = arith.constant 0 : i32
    %c0_i32_0 = arith.constant 0 : i32
    %c0_i32_1 = arith.constant 0 : i32
    return %c0_i32, %c0_i32_0 : i32, i32
  }
  func.func @transform_3(%arg0: i32, %arg1: i32) -> (i32, i32) {
    %c0_i32 = arith.constant 0 : i32
    %c0_i32_0 = arith.constant 0 : i32
    return %arg1, %c0_i32 : i32, i32
  }
  func.func @transform_4(%arg0: i32, %arg1: i32) -> (i32, i32) {
    %c0_i32 = arith.constant 0 : i32
    %c0_i32_0 = arith.constant 0 : i32
    %c0_i32_1 = arith.constant 0 : i32
    return %c0_i32, %c0_i32_0 : i32, i32
  }
  func.func @transform_5(%arg0: i32, %arg1: i32) -> (i32, i32) {
    %c0_i32 = arith.constant 0 : i32
    %c0_i32_0 = arith.constant 0 : i32
    return %arg0, %c0_i32 : i32, i32
  }
}

</mosaic_0001>

<bundles_post_ra>
// kernel: positionwise_ffn.1
= control target key start
LH: loop header
LB: loop body
LE: loop exit
PB: predicated region body
PF: predicated region fallthrough
CT: control target
= control target key end

     0   :  { %s810_s18 = smov 0   ;;  %s812_s19 = smov 0   ;;  %s968_s0 = inlined_call_operand.vmem [shape: f32[16,128], index: 0, kind: input, shape index: {}]   ;;  %s969_s1 = inlined_call_operand.vmem [shape: f32[128,128], index: 1, kind: input, shape index: {}]   ;;  %s970_s2 = inlined_call_operand.vmem [shape: f32[1,128], index: 2, kind: input, shape index: {}]   ;;  %s971_s3 = inlined_call_operand.vmem [shape: f32[128,128], index: 3, kind: input, shape index: {}]   ;;  %s972_s4 = inlined_call_operand.vmem [shape: f32[1,128], index: 4, kind: input, shape index: {}]   ;;  %s973_s5 = inlined_call_operand.vmem [shape: f32[16,128], index: 5, kind: output, shape index: {}]  }
   0x1   :  { %s814_s20 = smov 0  }
   0x2 LB: > { %s27_s21 = sadd.s32 1, %s771_s19  ;;  %p567_p0 = scmp.ge.s32.totalorder %s775_s20, 1  ;;  %s775_s20 = sphi %s814_s20, %s15_s20   ;;  %s771_s19 = sphi %s812_s19, %s975_s19   ;;  %s767_s18 = sphi %s810_s18, %s974_s18  }
   0x3   : > { %p29_p1 = scmp.ge.s32.totalorder %s27_s21, 2  ;;  %p218_p2 = scmp.lt.s32.totalorder %s775_s20, 3 }
   0x5   : > { %s977_s21 = smov (%p29_p1, %s27_s21), 0  ;;  %p219_p3 = pnand %p567_p0, %p218_p2 }
   0x6   : > { %v284_v0 = vld [vmem:[%s969_s1] sm:$0xff] (!%p219_p3)  ;;  %v285_v1 = vld [vmem:[%s969_s1 + $0x8] sm:$0xff] (!%p219_p3)  ;;  %v286_v2 = vld [vmem:[%s969_s1 + $0x10] sm:$0xff] (!%p219_p3)  ;;  %v777_v3 = vmov (!%p219_p3), 0.0|0.0   ;;  %vm778_vm0 = vmmov (!%p219_p3), 0   ;;  %v779_v6 = vmov (!%p219_p3), 0.0  }
   0x7   : > { %222 = sbr.rel (%p219_p3) target bundleno = 471 (0x1d7), region = 40  ;;  %678 = vmatprep.subr.bf16.mxu0 (!%p219_p3), %v777_v3  ;;  %v679_v4 = vpack.c.bf16 (!%p219_p3), %v285_v1, %v284_v0  ;;  %v287_v5 = vld [vmem:[%s969_s1 + $0x18] sm:$0xff] (!%p219_p3)  ;;  %640 = vmatprep.mubr.msk.f32.mxu0 (!%p219_p3), %vm778_vm0, %v779_v6  ;;  %v288_v8 = vld [vmem:[%s969_s1 + $0x20] sm:$0xff] (!%p219_p3)  ;;  %v289_v9 = vld [vmem:[%s969_s1 + $0x28] sm:$0xff] (!%p219_p3)  ;;  %p253_p4 = scmp.lt.s32.totalorder (!%p219_p3), %s767_s18, 1 }
   0x8   : > { %702 = vmatprep.subr.bf16.mxu1 (!%p219_p3), %v777_v3  ;;  %675 = vmatprep.mubr.msk.f32.mxu1 (!%p219_p3), %vm778_vm0, %v779_v6  ;;  %v682_v7 = vpack.c.bf16 (!%p219_p3), %v287_v5, %v286_v2  ;;  %v380_v10 = vld [vmem:[%s971_s3] sm:$0xff] (!%p219_p3)  ;;  %v381_v11 = vld [vmem:[%s971_s3 + $0x8] sm:$0xff] (!%p219_p3)  ;;  %v382_v13 = vld [vmem:[%s971_s3 + $0x10] sm:$0xff] (!%p219_p3)  ;;  %v685_v15 = vpack.c.bf16 (!%p219_p3), %v289_v9, %v288_v8 }
   0x9   : > { %680 = vmatpush3.bf16.msra.mxu0 (!%p219_p3), %v679_v4  ;;  %v703_v12 = vpack.c.bf16 (!%p219_p3), %v381_v11, %v380_v10  ;;  %v383_v14 = vld [vmem:[%s971_s3 + $0x18] sm:$0xff] (!%p219_p3)  ;;  %v290_v16 = vld [vmem:[%s969_s1 + $0x30] sm:$0xff] (!%p219_p3)  ;;  %v384_v19 = vld [vmem:[%s971_s3 + $0x20] sm:$0xff] (!%p219_p3) }
   0xa   : > { %681 = vmatprep.subr.bf16.mxu0 (!%p219_p3), %v777_v3  ;;  %v291_v17 = vld [vmem:[%s969_s1 + $0x38] sm:$0xff] (!%p219_p3)  ;;  %v706_v18 = vpack.c.bf16 (!%p219_p3), %v383_v14, %v382_v13  ;;  %v385_v20 = vld [vmem:[%s971_s3 + $0x28] sm:$0xff] (!%p219_p3)  ;;  %v292_v22 = vld [vmem:[%s969_s1 + $0x40] sm:$0xff] (!%p219_p3) }
   0xb   : > { %704 = vmatpush3.bf16.msra.mxu1 (!%p219_p3), %v703_v12  ;;  %v688_v21 = vpack.c.bf16 (!%p219_p3), %v291_v17, %v290_v16  ;;  %v293_v23 = vld [vmem:[%s969_s1 + $0x48] sm:$0xff] (!%p219_p3)  ;;  %v709_v24 = vpack.c.bf16 (!%p219_p3), %v385_v20, %v384_v19  ;;  %v386_v25 = vld [vmem:[%s971_s3 + $0x30] sm:$0xff] (!%p219_p3)  ;;  %v387_v26 = vld [vmem:[%s971_s3 + $0x38] sm:$0xff] (!%p219_p3) }
   0xc   : > { %705 = vmatprep.subr.bf16.mxu1 (!%p219_p3), %v777_v3  ;;  %v691_v27 = vpack.c.bf16 (!%p219_p3), %v293_v23, %v292_v22  ;;  %v294_v28 = vld [vmem:[%s969_s1 + $0x50] sm:$0xff] (!%p219_p3)  ;;  %v295_v29 = vld [vmem:[%s969_s1 + $0x58] sm:$0xff] (!%p219_p3)  ;;  %v712_v30 = vpack.c.bf16 (!%p219_p3), %v387_v26, %v386_v25  ;;  %v388_v31 = vld [vmem:[%s971_s3 + $0x40] sm:$0xff] (!%p219_p3) }
   0xd   : > { %683 = vmatpush3.bf16.msra.mxu0 (!%p219_p3), %v682_v7  ;;  %v389_v32 = vld [vmem:[%s971_s3 + $0x48] sm:$0xff] (!%p219_p3)  ;;  %v694_v33 = vpack.c.bf16 (!%p219_p3), %v295_v29, %v294_v28  ;;  %v296_v34 = vld [vmem:[%s969_s1 + $0x60] sm:$0xff] (!%p219_p3)  ;;  %v390_v37 = vld [vmem:[%s971_s3 + $0x50] sm:$0xff] (!%p219_p3) }
   0xe   : > { %684 = vmatprep.subr.bf16.mxu0 %v777_v3  ;;  %v297_v35 = vld [vmem:[%s969_s1 + $0x68] sm:$0xff]  ;;  %v715_v36 = vpack.c.bf16 %v389_v32, %v388_v31  ;;  %s979_s18 = smov (!%p253_p4, %s767_s18), 1  ;;  %v391_v38 = vld [vmem:[%s971_s3 + $0x58] sm:$0xff]  ;;  %v298_v40 = vld [vmem:[%s969_s1 + $0x70] sm:$0xff] }
   0xf   : > { %707 = vmatpush3.bf16.msra.mxu1 %v706_v18  ;;  %v697_v39 = vpack.c.bf16 %v297_v35, %v296_v34  ;;  %v299_v41 = vld [vmem:[%s969_s1 + $0x78] sm:$0xff]  ;;  %v718_v42 = vpack.c.bf16 %v391_v38, %v390_v37  ;;  %s568_s11 = sshll.u32 %s979_s18, 3  ;;  %v392_v43 = vld [vmem:[%s971_s3 + $0x60] sm:$0xff]  ;;  %v393_v44 = vld [vmem:[%s971_s3 + $0x68] sm:$0xff] }
  0x10   : > { %708 = vmatprep.subr.bf16.mxu1 %v777_v3  ;;  %v700_v45 = vpack.c.bf16 %v299_v41, %v298_v40  ;;  %s256_s22 = scalar_lea.vmem %s968_s0, %s568_s11  ;;  %v721_v46 = vpack.c.bf16 %v393_v44, %v392_v43  ;;  %v394_v48 = vld [vmem:[%s971_s3 + $0x70] sm:$0xff]  ;;  %v395_v49 = vld [vmem:[%s971_s3 + $0x78] sm:$0xff]  ;;  %v571_v51 = vld [vmem:[%s970_s2] ss:$0 sm:$0xff]  ;;  %s270_s7 = scalar_lea.vmem %s973_s5, %s568_s11 }
  0x11   : > { %686 = vmatpush3.bf16.msra.mxu0 %v685_v15  ;;  %v283_v47 = vld [vmem:[%s256_s22] sm:$0xff]  ;;  %v724_v50 = vpack.c.bf16 %v395_v49, %v394_v48 }
  0x12   : > { %687 = vmatprep.subr.bf16.mxu0 %v777_v3  ;;  %v570_v56 = vld [vmem:[%s972_s4] ss:$0 sm:$0xff] }
  0x13   : > { %710 = vmatpush3.bf16.msra.mxu1 %v709_v24 }
  0x14   : > { %711 = vmatprep.subr.bf16.mxu1 %v777_v3 }
  0x15   : > { %689 = vmatpush3.bf16.msra.mxu0 %v688_v21 }
  0x16   : > { %690 = vmatprep.subr.bf16.mxu0 %v777_v3 }
  0x17   : > { %713 = vmatpush3.bf16.msra.mxu1 %v712_v30 }
  0x18   : > { %714 = vmatprep.subr.bf16.mxu1 %v777_v3 }
  0x19   : > { %692 = vmatpush3.bf16.msra.mxu0 %v691_v27 }
  0x1a   : > { %693 = vmatprep.subr.bf16.mxu0 %v777_v3 }
  0x1b   : > { %716 = vmatpush3.bf16.msra.mxu1 %v715_v36 }
  0x1c   : > { %717 = vmatprep.subr.bf16.mxu1 %v777_v3 }
  0x1d   : > { %695 = vmatpush3.bf16.msra.mxu0 %v694_v33 }
  0x1e   : > { %696 = vmatprep.subr.bf16.mxu0 %v777_v3 }
  0x1f   : > { %719 = vmatpush3.bf16.msra.mxu1 %v718_v42 }
  0x20   : > { %720 = vmatprep.subr.bf16.mxu1 %v777_v3 }
  0x21   : > { %698 = vmatpush3.bf16.msra.mxu0 %v697_v39 }
  0x22   : > { %699 = vmatprep.subr.bf16.mxu0 %v777_v3 }
  0x23   : > { %722 = vmatpush3.bf16.msra.mxu1 %v721_v46 }
  0x24   : > { %723 = vmatprep.subr.bf16.mxu1 %v777_v3 }
  0x25   : > { %701 = vmatpush3.bf16.msra.mxu0 %v700_v45 }
  0x27   : > { %725 = vmatpush3.bf16.msra.mxu1 %v724_v50 }
  0x28   : > { %641 = vmatmul.mubr.f32.vlgmr.msra.gmra.mrb[0].mxu0 %v283_v47 }
  0xfb   : > { %v374_v52 = vpop.f32.mrb[0].mxu0 }
  0xfc   : > { %v375_v53 = vadd.f32 %v571_v51, %v374_v52  ;;  %v642_v54 = vpop.f32.mrb[1].mxu0 }
  0xfe   : > { %v378_v55 = vmax.f32 %v375_v53, 0.0 }
 0x100   : > { %676 = vmatmul.mubr.f32.vlgmr.msra.gmra.mrb[0].mxu1 %v378_v55 }
 0x1d3   : > { %v462_v57 = vpop.f32.mrb[0].mxu1 }
 0x1d4   : > { %v466_v58 = vadd.f32 %v570_v56, %v462_v57  ;;  %v677_v59 = vpop.f32.mrb[1].mxu1 }
 0x1d6   : > { %467 = vst [vmem:[%s270_s7] sm:$0xff] %v466_v58 }
 0x1d7 PF: > { %s15_s20 = sadd.s32 1, %s775_s20   ;;  %s974_s18 = smov %s771_s19 }
 0x1d8   : > { %p12_p5 = scmp.ge.s32.totalorder %s15_s20, 4   ;;  %s975_s19 = smov %s977_s21 }
 0x1da   :  { %14 = sbr.rel (!%p12_p5) target bundleno = 2 (0x2), region = 81 }

</bundles_post_ra>
